<compile_context>
chip_gen: v5e
topology: v5e:2x2
jax: 0.10.0
libtpu: 0.0.40
codegen_flags: <defaults>
</compile_context>

<pallas_src>
import functools

import jax
import jax.numpy as jnp
from jax.experimental import pallas as pl
from jax.experimental.pallas import tpu as pltpu

_LANES = 128
_TARGET_BLOCK_BYTES = 4 * 1024 * 1024   # per-buffer block size (v7x-friendly)
_VMEM_LIMIT_BYTES = 32 * 1024 * 1024    # scoped-VMEM limit, safe on v5e..v7x


def _qrelu_kernel(x_ref, o_ref):
    # Pure VPU elementwise max(x, 0) on the current VMEM tile.
    o_ref[...] = jnp.maximum(x_ref[...], jnp.zeros((), dtype=x_ref.dtype))


def _sublane_min(dtype) -> int:
    # Native sublane packing minimum: f32 -> 8, bf16 -> 16, int8/fp8 -> 32.
    return {4: 8, 2: 16, 1: 32}.get(jnp.dtype(dtype).itemsize, 8)


def _qrelu_impl(x: jax.Array) -> jax.Array:
    orig_shape = x.shape
    dtype = x.dtype
    itemsize = jnp.dtype(dtype).itemsize
    n_elem = x.size

    # Flatten; pad to a multiple of 128 only when strictly necessary so we can
    # present a lane-dense (M, 128) slab.  Rows are NOT padded: the cdiv grid
    # below masks the partial last row-block.
    n_padded = pl.cdiv(n_elem, _LANES) * _LANES
    x_flat = x.reshape(-1)
    needs_pad = n_padded != n_elem
    if needs_pad:
        # TODO(synk): ragged sizes take one extra pad/slice HBM pass; common
        # activation shapes (count % 128 == 0) avoid it entirely.
        x_flat = jnp.pad(x_flat, (0, n_padded - n_elem))
    m = n_padded // _LANES
    x2d = x_flat.reshape(m, _LANES)

    # Multi-MiB row tile (dtype-aware sublane minimum), clamped for small inputs.
    sub_min = _sublane_min(dtype)
    row_tile = max(_TARGET_BLOCK_BYTES // (_LANES * itemsize), sub_min)
    m_rounded = pl.cdiv(m, sub_min) * sub_min
    row_tile = min(row_tile, m_rounded)
    row_tile = (row_tile // sub_min) * sub_min  # keep a multiple of sublane min

    grid = (pl.cdiv(m, row_tile),)

    out2d = pl.pallas_call(
        _qrelu_kernel,
        out_shape=jax.ShapeDtypeStruct((m, _LANES), dtype),
        grid_spec=pltpu.PrefetchScalarGridSpec(
            num_scalar_prefetch=0,
            grid=grid,
            in_specs=[pl.BlockSpec((row_tile, _LANES), lambda i: (i, 0))],
            out_specs=pl.BlockSpec((row_tile, _LANES), lambda i: (i, 0)),
        ),
        compiler_params=pltpu.CompilerParams(
            dimension_semantics=("parallel",),  # shard grid across v7x's 2 TCs
            vmem_limit_bytes=_VMEM_LIMIT_BYTES,
        ),
        cost_estimate=pl.CostEstimate(
            flops=n_elem,
            transcendentals=0,
            bytes_accessed=2 * n_elem * itemsize,
        ),
    )(x2d)

    out_flat = out2d.reshape(-1)
    if needs_pad:
        out_flat = out_flat[:n_elem]
    return out_flat.reshape(orig_shape)


# Jitted entrypoint: reshape / pad / slice fuse around the custom call and the
# per-op dispatch overhead of the eager wrapper disappears.
qrelu = jax.jit(_qrelu_impl)


if __name__ == "__main__":
    # The module's _quants / _vals buffers are unused in forward(); initialize
    # them deterministically anyway for parity with __init__.
    _quants = jnp.array([0], dtype=jnp.int32)
    _vals = jnp.array([0], dtype=jnp.int32)

    key = jax.random.PRNGKey(0)
    x = jax.random.normal(key, (2, 4, 16, 16), dtype=jnp.float32)  # NCHW

    out = jax.block_until_ready(qrelu(x))

    ref = jnp.maximum(x, 0.0)
    assert out.shape == x.shape and out.dtype == x.dtype
    assert bool(jnp.allclose(out, ref)), "mismatch vs reference ReLU"

    # Extra sanity: a ragged size exercising the pad + masked-edge path.
    x2 = jax.random.normal(jax.random.PRNGKey(1), (3, 5, 7), dtype=jnp.float32)
    out2 = jax.block_until_ready(qrelu(x2))
    assert bool(jnp.allclose(out2, jnp.maximum(x2, 0.0))), "mismatch on ragged shape"

    # And a bf16 case exercising the 16-row sublane minimum.
    x3 = jax.random.normal(jax.random.PRNGKey(2), (2, 4, 16, 16), dtype=jnp.bfloat16)
    out3 = jax.block_until_ready(qrelu(x3))
    assert out3.dtype == jnp.bfloat16
    assert bool(jnp.allclose(out3, jnp.maximum(x3, 0), atol=0)), "mismatch on bf16"

    print("KERNEL_OK")
</pallas_src>

<mosaic_0001>
module attributes {stable_mosaic.version = 11 : i64} {
  func.func @_qrelu_kernel(%arg0: i32, %arg1: memref<16x128xf32, #tpu.memory_space<vmem>>, %arg2: memref<16x128xf32, #tpu.memory_space<vmem>>) attributes {dimension_semantics = [#tpu.dimension_semantics<parallel>], iteration_bounds = array<i64: 1>, scalar_prefetch = 0 : i64, scratch_operands = 0 : i64, tpu.core_type = #tpu.core_type<tc>, window_params = [{transform_indices = @transform_0, window_bounds = array<i64: 16, 128>}, {transform_indices = @transform_1, window_bounds = array<i64: 16, 128>}]} {
    %c0 = arith.constant 0 : index
    %c0_0 = arith.constant 0 : index
    %0 = vector.load %arg1[%c0, %c0_0] : memref<16x128xf32, #tpu.memory_space<vmem>>, vector<16x128xf32>
    %cst = arith.constant 0.000000e+00 : f32
    %1 = vector.broadcast %cst : f32 to vector<16x128xf32>
    %2 = arith.maximumf %0, %1 : vector<16x128xf32>
    %c0_1 = arith.constant 0 : index
    %c0_2 = arith.constant 0 : index
    %3 = vector.load %arg2[%c0_1, %c0_2] : memref<16x128xf32, #tpu.memory_space<vmem>>, vector<16x128xf32>
    tpu.vector_store %arg2[%c0_1, %c0_2], %2 {strides = array<i32>} : memref<16x128xf32, #tpu.memory_space<vmem>>, vector<16x128xf32>,
    return
  }
  func.func @transform_0(%arg0: i32) -> (i32, i32) {
    %c0_i32 = arith.constant 0 : i32
    %c0_i32_0 = arith.constant 0 : i32
    return %arg0, %c0_i32 : i32, i32
  }
  func.func @transform_1(%arg0: i32) -> (i32, i32) {
    %c0_i32 = arith.constant 0 : i32
    %c0_i32_0 = arith.constant 0 : i32
    return %arg0, %c0_i32 : i32, i32
  }
}

</mosaic_0001>

<bundles_post_ra>
// kernel: _qrelu_impl.1
= control target key start
LH: loop header
LB: loop body
LE: loop exit
PB: predicated region body
PF: predicated region fallthrough
CT: control target
= control target key end

     0   :  { %s40_s0 = inlined_call_operand.vmem [shape: f32[16,128], index: 0, kind: input, shape index: {}]   ;;  %s41_s1 = inlined_call_operand.vmem [shape: f32[16,128], index: 1, kind: output, shape index: {}]  }
   0x1   :  { %v8_v0 = vld [vmem:[%s40_s0] sm:$0xff]  ;;  %v9_v1 = vld [vmem:[%s40_s0 + $0x8] sm:$0xff] }
   0x2   :  { %v10_v2 = vmax.f32 %v8_v0, 0.0  ;;  %v11_v3 = vmax.f32 %v9_v1, 0.0 }
   0x4   :  { %12 = vst [vmem:[%s41_s1] sm:$0xff] %v10_v2 }
   0x5   :  { %13 = vst [vmem:[%s41_s1 + $0x8] sm:$0xff] %v11_v3 }

</bundles_post_ra>
